<compile_context>
chip_gen: v7x
topology: tpu7x:2x2x1
jax: 0.10.0
libtpu: 0.0.40
codegen_flags: <defaults>
</compile_context>

<pallas_src>
import math

import jax
import jax.numpy as jnp
from jax.experimental import pallas as pl
from jax.experimental.pallas import tpu as pltpu


# ---------------------------------------------------------------------------
# Kernel: single invocation, both branches computed in one body.
# ---------------------------------------------------------------------------
def _vae_rbf_branch(x_ref, eps_ref, we_ref, be_ref, wml_ref, bml_ref,
                    wd_ref, bd_ref, wo_ref, bo_ref, out_ref, lat_ref):
    """One VAErbf branch. All shapes are (8,128)-aligned; weights are bf16."""
    L = eps_ref.shape[-1]            # padded latent width (multiple of 128)

    x = x_ref[...]
    eps = eps_ref[...]

    # ---- encoder: Linear (bf16 MXU, f32 accumulate) + Gaussian RBF (f32 VPU/EUP)
    h = jnp.dot(x.astype(jnp.bfloat16), we_ref[...],
                preferred_element_type=jnp.float32) + be_ref[...]
    h = jnp.exp(-(h * h))

    # ---- fused latent heads: one MXU pass produces [mean | log_var]
    # NOTE: padded hidden lanes after the RBF are exp(0)=1, not 0; correctness relies
    # on w_ml / w_out keeping zero-padded ROWS (hid..H_pad) to annihilate them.
    ml = jnp.dot(h.astype(jnp.bfloat16), wml_ref[...],
                 preferred_element_type=jnp.float32) + bml_ref[...]
    mean = ml[:, :L]
    log_var = ml[:, L:]

    # ---- reparameterization (var = std*std saves one EUP exp vs exp(log_var))
    std = jnp.exp(0.5 * log_var)
    var = std * std
    z = mean + eps * std

    # ---- decoder: Linear + RBF, then linear output head
    d = jnp.dot(z.astype(jnp.bfloat16), wd_ref[...],
                preferred_element_type=jnp.float32) + bd_ref[...]
    d = jnp.exp(-(d * d))
    out = jnp.dot(d.astype(jnp.bfloat16), wo_ref[...],
                  preferred_element_type=jnp.float32) + bo_ref[...]

    # ---- lane-dense, 128-aligned stores (unmasked vst)
    out_ref[...] = out
    lat_ref[:, 0 * L:1 * L] = z
    lat_ref[:, 1 * L:2 * L] = mean
    lat_ref[:, 2 * L:3 * L] = var
    lat_ref[:, 3 * L:4 * L] = log_var


def _cor_vae_rbf_kernel(
        x_x_ref, eps_x_ref, we_x_ref, be_x_ref, wml_x_ref, bml_x_ref,
        wd_x_ref, bd_x_ref, wo_x_ref, bo_x_ref,
        x_y_ref, eps_y_ref, we_y_ref, be_y_ref, wml_y_ref, bml_y_ref,
        wd_y_ref, bd_y_ref, wo_y_ref, bo_y_ref,
        out_x_ref, lat_x_ref, out_y_ref, lat_y_ref):
    _vae_rbf_branch(x_x_ref, eps_x_ref, we_x_ref, be_x_ref, wml_x_ref, bml_x_ref,
                    wd_x_ref, bd_x_ref, wo_x_ref, bo_x_ref, out_x_ref, lat_x_ref)
    _vae_rbf_branch(x_y_ref, eps_y_ref, we_y_ref, be_y_ref, wml_y_ref, bml_y_ref,
                    wd_y_ref, bd_y_ref, wo_y_ref, bo_y_ref, out_y_ref, lat_y_ref)


# ---------------------------------------------------------------------------
# One-time parameter packing (padding, [mu|lv] fusion, bf16 cast) + jitted forward.
# ---------------------------------------------------------------------------
def _round_up(n, m):
    return ((n + m - 1) // m) * m


def _pad2(a, rows, cols, dtype=None):
    out = jnp.pad(a, ((0, rows - a.shape[0]), (0, cols - a.shape[1])))
    return out.astype(dtype) if dtype is not None else out


def _pack_branch(p):
    """Pad + pack one branch's weights. Runs ONCE (outside the per-call hot path)."""
    din, hid = p["w_enc"].shape
    lat = p["w_mu"].shape[1]
    dout = p["w_out"].shape[1]
    D = _round_up(din, 128)
    H = _round_up(hid, 128)
    L = _round_up(lat, 128)
    O = _round_up(dout, 128)

    w_enc = _pad2(p["w_enc"], D, H, jnp.bfloat16)
    b_enc = _pad2(p["b_enc"], 1, H)                       # biases stay f32
    # Fuse mu / log_var heads into one [H, 2L] bf16 weight.
    # Rows hid..H MUST stay zero (they multiply rbf(0)=1 padded hidden lanes).
    w_ml = jnp.concatenate([_pad2(p["w_mu"], H, L), _pad2(p["w_lv"], H, L)],
                           axis=1).astype(jnp.bfloat16)
    b_ml = jnp.concatenate([_pad2(p["b_mu"], 1, L), _pad2(p["b_lv"], 1, L)], axis=1)
    w_dec = _pad2(p["w_dec"], L, H, jnp.bfloat16)
    b_dec = _pad2(p["b_dec"], 1, H)
    w_out = _pad2(p["w_out"], H, O, jnp.bfloat16)         # zero rows hid..H as well
    b_out = _pad2(p["b_out"], 1, O)

    tensors = (w_enc, b_enc, w_ml, b_ml, w_dec, b_dec, w_out, b_out)
    meta = dict(din=din, hid=hid, lat=lat, dout=dout, D=D, H=H, L=L, O=O)
    return tensors, meta


def make_cor_vae_rbf(params_x, params_y):
    """Pack weights once; return a jitted forward that only pads x/eps per call."""
    wx, mx = _pack_branch(params_x)
    wy, my = _pack_branch(params_y)

    vmem_spec = pl.BlockSpec(memory_space=pltpu.MemorySpace.VMEM)

    @jax.jit
    def forward(x, y, eps_x, eps_y):
        B = x.shape[0]
        assert y.shape[0] == B, "both branches must share a batch size"
        B_pad = _round_up(max(B, 1), 8)

        # per-call data padding only (weights were padded once at build time)
        xp = _pad2(x, B_pad, mx["D"])
        ex = _pad2(eps_x, B_pad, mx["L"])
        yp = _pad2(y, B_pad, my["D"])
        ey = _pad2(eps_y, B_pad, my["L"])

        out_shape = (
            jax.ShapeDtypeStruct((B_pad, mx["O"]), jnp.float32),       # recon x
            jax.ShapeDtypeStruct((B_pad, 4 * mx["L"]), jnp.float32),   # [z|mean|var|lv] x
            jax.ShapeDtypeStruct((B_pad, my["O"]), jnp.float32),       # recon y
            jax.ShapeDtypeStruct((B_pad, 4 * my["L"]), jnp.float32),   # [z|mean|var|lv] y
        )

        def branch_cost(m):
            flops = 2 * B_pad * (m["D"] * m["H"] + m["H"] * 2 * m["L"]
                                 + m["L"] * m["H"] + m["H"] * m["O"])
            trans = B_pad * (2 * m["H"] + m["L"])
            return flops, trans

        fx, tx = branch_cost(mx)
        fy, ty = branch_cost(my)
        inputs = (xp, ex, *wx, yp, ey, *wy)
        in_bytes = sum(int(a.size) * a.dtype.itemsize for a in inputs)
        out_bytes = sum(math.prod(s.shape) * 4 for s in out_shape)
        cost = pl.CostEstimate(flops=fx + fy, transcendentals=tx + ty,
                               bytes_accessed=in_bytes + out_bytes)

        out_x, lat_x, out_y, lat_y = pl.pallas_call(
            _cor_vae_rbf_kernel,
            out_shape=out_shape,
            in_specs=[vmem_spec] * len(inputs),
            out_specs=(vmem_spec,) * len(out_shape),
            cost_estimate=cost,
        )(*inputs)

        def unpack(out, lat, m):
            L, l = m["L"], m["lat"]
            o = out[:B, :m["dout"]]
            z = lat[:B, 0 * L:0 * L + l]
            mean = lat[:B, 1 * L:1 * L + l]
            var = lat[:B, 2 * L:2 * L + l]
            log_var = lat[:B, 3 * L:3 * L + l]
            return o, z, mean, var, log_var

        return (*unpack(out_x, lat_x, mx), *unpack(out_y, lat_y, my))

    return forward


# ---------------------------------------------------------------------------
# Deterministic parameter init (PyTorch nn.Linear default: U(-1/sqrt(in), 1/sqrt(in)))
# Weights stored pre-transposed as [in_features, out_features].
# ---------------------------------------------------------------------------
def _init_linear(key, in_dim, out_dim):
    kw, kb = jax.random.split(key)
    bound = 1.0 / (in_dim ** 0.5)
    w = jax.random.uniform(kw, (in_dim, out_dim), jnp.float32, -bound, bound)
    b = jax.random.uniform(kb, (1, out_dim), jnp.float32, -bound, bound)
    return w, b


def init_vae_rbf_params(key, input_dim, hidden_dim, latent_dim, output_dim):
    k = jax.random.split(key, 5)
    w_enc, b_enc = _init_linear(k[0], input_dim, hidden_dim)
    w_mu, b_mu = _init_linear(k[1], hidden_dim, latent_dim)
    w_lv, b_lv = _init_linear(k[2], hidden_dim, latent_dim)
    w_dec, b_dec = _init_linear(k[3], latent_dim, hidden_dim)
    w_out, b_out = _init_linear(k[4], hidden_dim, output_dim)
    return dict(w_enc=w_enc, b_enc=b_enc, w_mu=w_mu, b_mu=b_mu,
                w_lv=w_lv, b_lv=b_lv, w_dec=w_dec, b_dec=b_dec,
                w_out=w_out, b_out=b_out)


def _vae_rbf_reference(xb, epsb, p):
    """Pure-JAX f32 reference for one branch (same math, unpadded)."""
    h = jnp.exp(-jnp.square(xb @ p["w_enc"] + p["b_enc"]))
    mean = h @ p["w_mu"] + p["b_mu"]
    log_var = h @ p["w_lv"] + p["b_lv"]
    var = jnp.exp(log_var)
    std = jnp.exp(0.5 * log_var)
    z = mean + epsb * std
    d = jnp.exp(-jnp.square(z @ p["w_dec"] + p["b_dec"]))
    out = d @ p["w_out"] + p["b_out"]
    return out, z, mean, var, log_var


if __name__ == "__main__":
    # Small shapes consistent with CorVAERbf(input_dim_x, hidden_dim_x, input_dim_y,
    #                                         hidden_dim_y, latent_dim_x, latent_dim_y)
    batch = 8
    input_dim_x, hidden_dim_x, latent_dim_x = 16, 32, 8
    input_dim_y, hidden_dim_y, latent_dim_y = 24, 32, 8

    root = jax.random.PRNGKey(0)
    k_px, k_py, k_x, k_y, k_ex, k_ey = jax.random.split(root, 6)

    params_x = init_vae_rbf_params(k_px, input_dim_x, hidden_dim_x, latent_dim_x, input_dim_x)
    params_y = init_vae_rbf_params(k_py, input_dim_y, hidden_dim_y, latent_dim_y, input_dim_y)

    x = jax.random.normal(k_x, (batch, input_dim_x), jnp.float32)
    y = jax.random.normal(k_y, (batch, input_dim_y), jnp.float32)
    # reparameterization noise (deterministic here; torch.randn_like in the original)
    eps_x = jax.random.normal(k_ex, (batch, latent_dim_x), jnp.float32)
    eps_y = jax.random.normal(k_ey, (batch, latent_dim_y), jnp.float32)

    # weights are padded / packed / bf16-cast exactly once, outside the hot path
    cor_vae_rbf = make_cor_vae_rbf(params_x, params_y)

    outs = cor_vae_rbf(x, y, eps_x, eps_y)
    outs = jax.block_until_ready(outs)

    (output_x, z_x, mean_x, var_x, log_var_x,
     output_y, z_y, mean_y, var_y, log_var_y) = outs

    # shape / sanity checks
    assert output_x.shape == (batch, input_dim_x)
    assert z_x.shape == mean_x.shape == var_x.shape == log_var_x.shape == (batch, latent_dim_x)
    assert output_y.shape == (batch, input_dim_y)
    assert z_y.shape == mean_y.shape == var_y.shape == log_var_y.shape == (batch, latent_dim_y)
    assert bool(jnp.all(var_x > 0)) and bool(jnp.all(var_y > 0))
    assert all(bool(jnp.all(jnp.isfinite(o))) for o in outs)

    # numerical parity vs pure-JAX f32 reference (kernel matmuls ride the MXU in bf16
    # with f32 accumulation, so tolerances are loosened accordingly)
    ref_x = _vae_rbf_reference(x, eps_x, params_x)
    ref_y = _vae_rbf_reference(y, eps_y, params_y)
    for got, ref in zip((output_x, z_x, mean_x, var_x, log_var_x), ref_x):
        assert bool(jnp.allclose(got, ref, rtol=5e-2, atol=5e-2))
    for got, ref in zip((output_y, z_y, mean_y, var_y, log_var_y), ref_y):
        assert bool(jnp.allclose(got, ref, rtol=5e-2, atol=5e-2))

    print("KERNEL_OK")
</pallas_src>

<mosaic_0001>
module attributes {stable_mosaic.version = 11 : i64} {
  func.func @_cor_vae_rbf_kernel(%arg0: memref<8x128xf32, #tpu.memory_space<vmem>>, %arg1: memref<8x128xf32, #tpu.memory_space<vmem>>, %arg2: memref<128x128xbf16, #tpu.memory_space<vmem>>, %arg3: memref<1x128xf32, #tpu.memory_space<vmem>>, %arg4: memref<128x256xbf16, #tpu.memory_space<vmem>>, %arg5: memref<1x256xf32, #tpu.memory_space<vmem>>, %arg6: memref<128x128xbf16, #tpu.memory_space<vmem>>, %arg7: memref<1x128xf32, #tpu.memory_space<vmem>>, %arg8: memref<128x128xbf16, #tpu.memory_space<vmem>>, %arg9: memref<1x128xf32, #tpu.memory_space<vmem>>, %arg10: memref<8x128xf32, #tpu.memory_space<vmem>>, %arg11: memref<8x128xf32, #tpu.memory_space<vmem>>, %arg12: memref<128x128xbf16, #tpu.memory_space<vmem>>, %arg13: memref<1x128xf32, #tpu.memory_space<vmem>>, %arg14: memref<128x256xbf16, #tpu.memory_space<vmem>>, %arg15: memref<1x256xf32, #tpu.memory_space<vmem>>, %arg16: memref<128x128xbf16, #tpu.memory_space<vmem>>, %arg17: memref<1x128xf32, #tpu.memory_space<vmem>>, %arg18: memref<128x128xbf16, #tpu.memory_space<vmem>>, %arg19: memref<1x128xf32, #tpu.memory_space<vmem>>, %arg20: memref<8x128xf32, #tpu.memory_space<vmem>>, %arg21: memref<8x512xf32, #tpu.memory_space<vmem>>, %arg22: memref<8x128xf32, #tpu.memory_space<vmem>>, %arg23: memref<8x512xf32, #tpu.memory_space<vmem>>) attributes {dimension_semantics = [], scalar_prefetch = 0 : i64, scratch_operands = 0 : i64, tpu.core_type = #tpu.core_type<tc>} {
    %c0 = arith.constant 0 : index
    %c0_0 = arith.constant 0 : index
    %0 = vector.load %arg0[%c0, %c0_0] : memref<8x128xf32, #tpu.memory_space<vmem>>, vector<8x128xf32>
    %c0_1 = arith.constant 0 : index
    %c0_2 = arith.constant 0 : index
    %1 = vector.load %arg1[%c0_1, %c0_2] : memref<8x128xf32, #tpu.memory_space<vmem>>, vector<8x128xf32>
    %2 = arith.truncf %0 : vector<8x128xf32> to vector<8x128xbf16>
    %c0_3 = arith.constant 0 : index
    %c0_4 = arith.constant 0 : index
    %3 = vector.load %arg2[%c0_3, %c0_4] : memref<128x128xbf16, #tpu.memory_space<vmem>>, vector<128x128xbf16>
    %cst = arith.constant dense<0.000000e+00> : vector<8x128xf32>
    %4 = tpu.matmul %2, %3, %cst {dimension_numbers = #tpu.dot_dimension_numbers<[1], [0], [0], [1], [0, 0, 1, 1], [], []>} : vector<8x128xbf16>, vector<128x128xbf16>, vector<8x128xf32> -> vector<8x128xf32>
    %c0_5 = arith.constant 0 : index
    %c0_6 = arith.constant 0 : index
    %5 = vector.load %arg3[%c0_5, %c0_6] : memref<1x128xf32, #tpu.memory_space<vmem>>, vector<1x128xf32>
    %6 = vector.broadcast %5 : vector<1x128xf32> to vector<8x128xf32>
    %7 = arith.addf %4, %6 : vector<8x128xf32>
    %8 = arith.mulf %7, %7 : vector<8x128xf32>
    %cst_7 = arith.constant 0.000000e+00 : f32
    %9 = vector.broadcast %cst_7 : f32 to vector<8x128xf32>
    %10 = arith.subf %9, %8 : vector<8x128xf32>
    %11 = math.exp %10 : vector<8x128xf32>
    %12 = arith.truncf %11 : vector<8x128xf32> to vector<8x128xbf16>
    %c0_8 = arith.constant 0 : index
    %c0_9 = arith.constant 0 : index
    %13 = vector.load %arg4[%c0_8, %c0_9] : memref<128x256xbf16, #tpu.memory_space<vmem>>, vector<128x256xbf16>
    %cst_10 = arith.constant dense<0.000000e+00> : vector<8x256xf32>
    %14 = tpu.matmul %12, %13, %cst_10 {dimension_numbers = #tpu.dot_dimension_numbers<[1], [0], [0], [1], [0, 0, 1, 1], [], []>} : vector<8x128xbf16>, vector<128x256xbf16>, vector<8x256xf32> -> vector<8x256xf32>
    %c0_11 = arith.constant 0 : index
    %c0_12 = arith.constant 0 : index
    %15 = vector.load %arg5[%c0_11, %c0_12] : memref<1x256xf32, #tpu.memory_space<vmem>>, vector<1x256xf32>
    %16 = vector.broadcast %15 : vector<1x256xf32> to vector<8x256xf32>
    %17 = arith.addf %14, %16 : vector<8x256xf32>
    %18 = vector.extract_strided_slice %17 {offsets = [0, 0], sizes = [8, 128], strides = [1, 1]} : vector<8x256xf32> to vector<8x128xf32>
    %19 = vector.extract_strided_slice %17 {offsets = [0, 128], sizes = [8, 128], strides = [1, 1]} : vector<8x256xf32> to vector<8x128xf32>
    %cst_13 = arith.constant 5.000000e-01 : f32
    %20 = vector.broadcast %cst_13 : f32 to vector<8x128xf32>
    %21 = arith.mulf %20, %19 : vector<8x128xf32>
    %22 = math.exp %21 : vector<8x128xf32>
    %23 = arith.mulf %22, %22 : vector<8x128xf32>
    %24 = arith.mulf %1, %22 : vector<8x128xf32>
    %25 = arith.addf %18, %24 : vector<8x128xf32>
    %26 = arith.truncf %25 : vector<8x128xf32> to vector<8x128xbf16>
    %c0_14 = arith.constant 0 : index
    %c0_15 = arith.constant 0 : index
    %27 = vector.load %arg6[%c0_14, %c0_15] : memref<128x128xbf16, #tpu.memory_space<vmem>>, vector<128x128xbf16>
    %cst_16 = arith.constant dense<0.000000e+00> : vector<8x128xf32>
    %28 = tpu.matmul %26, %27, %cst_16 {dimension_numbers = #tpu.dot_dimension_numbers<[1], [0], [0], [1], [0, 0, 1, 1], [], []>} : vector<8x128xbf16>, vector<128x128xbf16>, vector<8x128xf32> -> vector<8x128xf32>
    %c0_17 = arith.constant 0 : index
    %c0_18 = arith.constant 0 : index
    %29 = vector.load %arg7[%c0_17, %c0_18] : memref<1x128xf32, #tpu.memory_space<vmem>>, vector<1x128xf32>
    %30 = vector.broadcast %29 : vector<1x128xf32> to vector<8x128xf32>
    %31 = arith.addf %28, %30 : vector<8x128xf32>
    %32 = arith.mulf %31, %31 : vector<8x128xf32>
    %cst_19 = arith.constant 0.000000e+00 : f32
    %33 = vector.broadcast %cst_19 : f32 to vector<8x128xf32>
    %34 = arith.subf %33, %32 : vector<8x128xf32>
    %35 = math.exp %34 : vector<8x128xf32>
    %36 = arith.truncf %35 : vector<8x128xf32> to vector<8x128xbf16>
    %c0_20 = arith.constant 0 : index
    %c0_21 = arith.constant 0 : index
    %37 = vector.load %arg8[%c0_20, %c0_21] : memref<128x128xbf16, #tpu.memory_space<vmem>>, vector<128x128xbf16>
    %cst_22 = arith.constant dense<0.000000e+00> : vector<8x128xf32>
    %38 = tpu.matmul %36, %37, %cst_22 {dimension_numbers = #tpu.dot_dimension_numbers<[1], [0], [0], [1], [0, 0, 1, 1], [], []>} : vector<8x128xbf16>, vector<128x128xbf16>, vector<8x128xf32> -> vector<8x128xf32>
    %c0_23 = arith.constant 0 : index
    %c0_24 = arith.constant 0 : index
    %39 = vector.load %arg9[%c0_23, %c0_24] : memref<1x128xf32, #tpu.memory_space<vmem>>, vector<1x128xf32>
    %40 = vector.broadcast %39 : vector<1x128xf32> to vector<8x128xf32>
    %41 = arith.addf %38, %40 : vector<8x128xf32>
    %c0_25 = arith.constant 0 : index
    %c0_26 = arith.constant 0 : index
    %42 = vector.load %arg20[%c0_25, %c0_26] : memref<8x128xf32, #tpu.memory_space<vmem>>, vector<8x128xf32>
    tpu.vector_store %arg20[%c0_25, %c0_26], %41 {strides = array<i32>} : memref<8x128xf32, #tpu.memory_space<vmem>>, vector<8x128xf32>,
    %c0_27 = arith.constant 0 : index
    %c0_28 = arith.constant 0 : index
    %43 = vector.load %arg21[%c0_27, %c0_28] : memref<8x512xf32, #tpu.memory_space<vmem>>, vector<8x128xf32>
    tpu.vector_store %arg21[%c0_27, %c0_28], %25 {strides = array<i32>} : memref<8x512xf32, #tpu.memory_space<vmem>>, vector<8x128xf32>,
    %c0_29 = arith.constant 0 : index
    %c128 = arith.constant 128 : index
    %44 = vector.load %arg21[%c0_29, %c128] : memref<8x512xf32, #tpu.memory_space<vmem>>, vector<8x128xf32>
    tpu.vector_store %arg21[%c0_29, %c128], %18 {strides = array<i32>} : memref<8x512xf32, #tpu.memory_space<vmem>>, vector<8x128xf32>,
    %c0_30 = arith.constant 0 : index
    %c256 = arith.constant 256 : index
    %45 = vector.load %arg21[%c0_30, %c256] : memref<8x512xf32, #tpu.memory_space<vmem>>, vector<8x128xf32>
    tpu.vector_store %arg21[%c0_30, %c256], %23 {strides = array<i32>} : memref<8x512xf32, #tpu.memory_space<vmem>>, vector<8x128xf32>,
    %c0_31 = arith.constant 0 : index
    %c384 = arith.constant 384 : index
    %46 = vector.load %arg21[%c0_31, %c384] : memref<8x512xf32, #tpu.memory_space<vmem>>, vector<8x128xf32>
    tpu.vector_store %arg21[%c0_31, %c384], %19 {strides = array<i32>} : memref<8x512xf32, #tpu.memory_space<vmem>>, vector<8x128xf32>,
    %c0_32 = arith.constant 0 : index
    %c0_33 = arith.constant 0 : index
    %47 = vector.load %arg10[%c0_32, %c0_33] : memref<8x128xf32, #tpu.memory_space<vmem>>, vector<8x128xf32>
    %c0_34 = arith.constant 0 : index
    %c0_35 = arith.constant 0 : index
    %48 = vector.load %arg11[%c0_34, %c0_35] : memref<8x128xf32, #tpu.memory_space<vmem>>, vector<8x128xf32>
    %49 = arith.truncf %47 : vector<8x128xf32> to vector<8x128xbf16>
    %c0_36 = arith.constant 0 : index
    %c0_37 = arith.constant 0 : index
    %50 = vector.load %arg12[%c0_36, %c0_37] : memref<128x128xbf16, #tpu.memory_space<vmem>>, vector<128x128xbf16>
    %cst_38 = arith.constant dense<0.000000e+00> : vector<8x128xf32>
    %51 = tpu.matmul %49, %50, %cst_38 {dimension_numbers = #tpu.dot_dimension_numbers<[1], [0], [0], [1], [0, 0, 1, 1], [], []>} : vector<8x128xbf16>, vector<128x128xbf16>, vector<8x128xf32> -> vector<8x128xf32>
    %c0_39 = arith.constant 0 : index
    %c0_40 = arith.constant 0 : index
    %52 = vector.load %arg13[%c0_39, %c0_40] : memref<1x128xf32, #tpu.memory_space<vmem>>, vector<1x128xf32>
    %53 = vector.broadcast %52 : vector<1x128xf32> to vector<8x128xf32>
    %54 = arith.addf %51, %53 : vector<8x128xf32>
    %55 = arith.mulf %54, %54 : vector<8x128xf32>
    %cst_41 = arith.constant 0.000000e+00 : f32
    %56 = vector.broadcast %cst_41 : f32 to vector<8x128xf32>
    %57 = arith.subf %56, %55 : vector<8x128xf32>
    %58 = math.exp %57 : vector<8x128xf32>
    %59 = arith.truncf %58 : vector<8x128xf32> to vector<8x128xbf16>
    %c0_42 = arith.constant 0 : index
    %c0_43 = arith.constant 0 : index
    %60 = vector.load %arg14[%c0_42, %c0_43] : memref<128x256xbf16, #tpu.memory_space<vmem>>, vector<128x256xbf16>
    %cst_44 = arith.constant dense<0.000000e+00> : vector<8x256xf32>
    %61 = tpu.matmul %59, %60, %cst_44 {dimension_numbers = #tpu.dot_dimension_numbers<[1], [0], [0], [1], [0, 0, 1, 1], [], []>} : vector<8x128xbf16>, vector<128x256xbf16>, vector<8x256xf32> -> vector<8x256xf32>
    %c0_45 = arith.constant 0 : index
    %c0_46 = arith.constant 0 : index
    %62 = vector.load %arg15[%c0_45, %c0_46] : memref<1x256xf32, #tpu.memory_space<vmem>>, vector<1x256xf32>
    %63 = vector.broadcast %62 : vector<1x256xf32> to vector<8x256xf32>
    %64 = arith.addf %61, %63 : vector<8x256xf32>
    %65 = vector.extract_strided_slice %64 {offsets = [0, 0], sizes = [8, 128], strides = [1, 1]} : vector<8x256xf32> to vector<8x128xf32>
    %66 = vector.extract_strided_slice %64 {offsets = [0, 128], sizes = [8, 128], strides = [1, 1]} : vector<8x256xf32> to vector<8x128xf32>
    %cst_47 = arith.constant 5.000000e-01 : f32
    %67 = vector.broadcast %cst_47 : f32 to vector<8x128xf32>
    %68 = arith.mulf %67, %66 : vector<8x128xf32>
    %69 = math.exp %68 : vector<8x128xf32>
    %70 = arith.mulf %69, %69 : vector<8x128xf32>
    %71 = arith.mulf %48, %69 : vector<8x128xf32>
    %72 = arith.addf %65, %71 : vector<8x128xf32>
    %73 = arith.truncf %72 : vector<8x128xf32> to vector<8x128xbf16>
    %c0_48 = arith.constant 0 : index
    %c0_49 = arith.constant 0 : index
    %74 = vector.load %arg16[%c0_48, %c0_49] : memref<128x128xbf16, #tpu.memory_space<vmem>>, vector<128x128xbf16>
    %cst_50 = arith.constant dense<0.000000e+00> : vector<8x128xf32>
    %75 = tpu.matmul %73, %74, %cst_50 {dimension_numbers = #tpu.dot_dimension_numbers<[1], [0], [0], [1], [0, 0, 1, 1], [], []>} : vector<8x128xbf16>, vector<128x128xbf16>, vector<8x128xf32> -> vector<8x128xf32>
    %c0_51 = arith.constant 0 : index
    %c0_52 = arith.constant 0 : index
    %76 = vector.load %arg17[%c0_51, %c0_52] : memref<1x128xf32, #tpu.memory_space<vmem>>, vector<1x128xf32>
    %77 = vector.broadcast %76 : vector<1x128xf32> to vector<8x128xf32>
    %78 = arith.addf %75, %77 : vector<8x128xf32>
    %79 = arith.mulf %78, %78 : vector<8x128xf32>
    %cst_53 = arith.constant 0.000000e+00 : f32
    %80 = vector.broadcast %cst_53 : f32 to vector<8x128xf32>
    %81 = arith.subf %80, %79 : vector<8x128xf32>
    %82 = math.exp %81 : vector<8x128xf32>
    %83 = arith.truncf %82 : vector<8x128xf32> to vector<8x128xbf16>
    %c0_54 = arith.constant 0 : index
    %c0_55 = arith.constant 0 : index
    %84 = vector.load %arg18[%c0_54, %c0_55] : memref<128x128xbf16, #tpu.memory_space<vmem>>, vector<128x128xbf16>
    %cst_56 = arith.constant dense<0.000000e+00> : vector<8x128xf32>
    %85 = tpu.matmul %83, %84, %cst_56 {dimension_numbers = #tpu.dot_dimension_numbers<[1], [0], [0], [1], [0, 0, 1, 1], [], []>} : vector<8x128xbf16>, vector<128x128xbf16>, vector<8x128xf32> -> vector<8x128xf32>
    %c0_57 = arith.constant 0 : index
    %c0_58 = arith.constant 0 : index
    %86 = vector.load %arg19[%c0_57, %c0_58] : memref<1x128xf32, #tpu.memory_space<vmem>>, vector<1x128xf32>
    %87 = vector.broadcast %86 : vector<1x128xf32> to vector<8x128xf32>
    %88 = arith.addf %85, %87 : vector<8x128xf32>
    %c0_59 = arith.constant 0 : index
    %c0_60 = arith.constant 0 : index
    %89 = vector.load %arg22[%c0_59, %c0_60] : memref<8x128xf32, #tpu.memory_space<vmem>>, vector<8x128xf32>
    tpu.vector_store %arg22[%c0_59, %c0_60], %88 {strides = array<i32>} : memref<8x128xf32, #tpu.memory_space<vmem>>, vector<8x128xf32>,
    %c0_61 = arith.constant 0 : index
    %c0_62 = arith.constant 0 : index
    %90 = vector.load %arg23[%c0_61, %c0_62] : memref<8x512xf32, #tpu.memory_space<vmem>>, vector<8x128xf32>
    tpu.vector_store %arg23[%c0_61, %c0_62], %72 {strides = array<i32>} : memref<8x512xf32, #tpu.memory_space<vmem>>, vector<8x128xf32>,
    %c0_63 = arith.constant 0 : index
    %c128_64 = arith.constant 128 : index
    %91 = vector.load %arg23[%c0_63, %c128_64] : memref<8x512xf32, #tpu.memory_space<vmem>>, vector<8x128xf32>
    tpu.vector_store %arg23[%c0_63, %c128_64], %65 {strides = array<i32>} : memref<8x512xf32, #tpu.memory_space<vmem>>, vector<8x128xf32>,
    %c0_65 = arith.constant 0 : index
    %c256_66 = arith.constant 256 : index
    %92 = vector.load %arg23[%c0_65, %c256_66] : memref<8x512xf32, #tpu.memory_space<vmem>>, vector<8x128xf32>
    tpu.vector_store %arg23[%c0_65, %c256_66], %70 {strides = array<i32>} : memref<8x512xf32, #tpu.memory_space<vmem>>, vector<8x128xf32>,
    %c0_67 = arith.constant 0 : index
    %c384_68 = arith.constant 384 : index
    %93 = vector.load %arg23[%c0_67, %c384_68] : memref<8x512xf32, #tpu.memory_space<vmem>>, vector<8x128xf32>
    tpu.vector_store %arg23[%c0_67, %c384_68], %66 {strides = array<i32>} : memref<8x512xf32, #tpu.memory_space<vmem>>, vector<8x128xf32>,
    return
  }
}

</mosaic_0001>

<bundles_post_ra>
// kernel: forward.1
= control target key start
LH: loop header
LB: loop body
LE: loop exit
PB: predicated region body
PF: predicated region fallthrough
CT: control target
= control target key end

     0   :  { %s2066_s0 = inlined_call_operand.vmem [shape: f32[8,128], index: 0, kind: input, shape index: {}]   ;;  %s2067_s1 = inlined_call_operand.vmem [shape: f32[8,128], index: 1, kind: input, shape index: {}]   ;;  %s2068_s2 = inlined_call_operand.vmem [shape: bf16[128,128], index: 2, kind: input, shape index: {}]   ;;  %s2069_s3 = inlined_call_operand.vmem [shape: f32[1,128], index: 3, kind: input, shape index: {}]   ;;  %s2070_s4 = inlined_call_operand.vmem [shape: bf16[128,256], index: 4, kind: input, shape index: {}]   ;;  %s2071_s5 = inlined_call_operand.vmem [shape: f32[1,256], index: 5, kind: input, shape index: {}]   ;;  %s2072_s6 = inlined_call_operand.vmem [shape: bf16[128,128], index: 6, kind: input, shape index: {}]   ;;  %s2073_s7 = inlined_call_operand.vmem [shape: f32[1,128], index: 7, kind: input, shape index: {}]   ;;  %s2074_s8 = inlined_call_operand.vmem [shape: bf16[128,128], index: 8, kind: input, shape index: {}]   ;;  %s2075_s9 = inlined_call_operand.vmem [shape: f32[1,128], index: 9, kind: input, shape index: {}]   ;;  %s2076_s10 = inlined_call_operand.vmem [shape: f32[8,128], index: 10, kind: input, shape index: {}]   ;;  %s2077_s11 = inlined_call_operand.vmem [shape: f32[8,128], index: 11, kind: input, shape index: {}]   ;;  %s2078_s12 = inlined_call_operand.vmem [shape: bf16[128,128], index: 12, kind: input, shape index: {}]   ;;  %s2079_s13 = inlined_call_operand.vmem [shape: f32[1,128], index: 13, kind: input, shape index: {}]   ;;  %s2080_s14 = inlined_call_operand.vmem [shape: bf16[128,256], index: 14, kind: input, shape index: {}]   ;;  %s2081_s15 = inlined_call_operand.vmem [shape: f32[1,256], index: 15, kind: input, shape index: {}]   ;;  %s2082_s16 = inlined_call_operand.vmem [shape: bf16[128,128], index: 16, kind: input, shape index: {}]   ;;  %s2083_s17 = inlined_call_operand.vmem [shape: f32[1,128], index: 17, kind: input, shape index: {}]   ;;  %s2084_s18 = inlined_call_operand.vmem [shape: bf16[128,128], index: 18, kind: input, shape index: {}]   ;;  %s2085_s19 = inlined_call_operand.vmem [shape: f32[1,128], index: 19, kind: input, shape index: {}]   ;;  %s2086_s20 = inlined_call_operand.hbm [shape: f32[8,128], index: 20, kind: output, shape index: {0}]   ;;  %s2087_s21 = inlined_call_operand.vmem [shape: f32[8,512], index: 21, kind: output, shape index: {1}]   ;;  %s2088_s22 = inlined_call_operand.hbm [shape: f32[8,128], index: 22, kind: output, shape index: {2}]   ;;  %s2089_s23 = inlined_call_operand.vmem [shape: f32[8,512], index: 23, kind: output, shape index: {3}]  }
   0x1   :  { %2093 = sst [smem:[#allocation8_spill]] %s2066_s0 }
   0x2   :  { %2094 = sst [smem:[#allocation9_spill]] %s2067_s1 }
   0x3   :  { %2095 = sst [smem:[#allocation10_spill]] %s2068_s2 }
   0x4   :  { %2096 = sst [smem:[#allocation11_spill]] %s2069_s3 }
   0x5   :  { %2097 = sst [smem:[#allocation12_spill]] %s2070_s4 }
   0x6   :  { %2098 = sst [smem:[#allocation13_spill]] %s2071_s5 }
   0x7   :  { %2099 = sst [smem:[#allocation14_spill]] %s2072_s6 }
   0x8   :  { %2100 = sst [smem:[#allocation15_spill]] %s2073_s7 }
   0x9   :  { %29 = vsyncpa [#allocation3], 0  ;;  %s2101_s24 = sld [smem:[#allocation10_spill]]  ;;  %v1543_v1 = vmov 0.0   ;;  %vm1544_vm0 = vmmov 0   ;;  %s2102_s27 = sld [smem:[#allocation12_spill]] }
   0xa   :  { %1262 = vmatprep.subr.bf16.mxu0 %v1543_v1  ;;  %1278 = vmatprep.mubr.msk.bf16.mxu0 %vm1544_vm0, %v1543_v1  ;;  %s2103_s1 = sld [smem:[#allocation8_spill]] }
   0xf   :  { %v1387_v0 = vld [vmem:[%s2101_s24] sm:$0xff]   ;;  %v1388_v2 = vld [vmem:[%s2101_s24 + $0x8] sm:$0xff]   ;;  %v1389_v3 = vld [vmem:[%s2101_s24 + $0x10] sm:$0xff]  }
  0x10   :  { %1263 = vmatpush3.bf16.msra.mxu0 %v1387_v0  ;;  %v1395_v4 = vld [vmem:[%s2102_s27 + $0x4] ss:$8 sps:$4 sm:$0xff]   ;;  %v1397_v5 = vld [vmem:[%s2102_s27] ss:$8 sps:$4 sm:$0xff]   ;;  %v1390_v6 = vld [vmem:[%s2101_s24 + $0x18] sm:$0xff]  }
  0x11   :  { %1264 = vmatprep.subr.bf16.mxu0 %v1543_v1  ;;  %v1398_v7 = vld [vmem:[%s2102_s27 + $0x14] ss:$8 sps:$4 sm:$0xff]   ;;  %299 = vmatprep.subr.bf16.mxu1 %v1395_v4  ;;  %v1391_v8 = vld [vmem:[%s2101_s24 + $0x20] sm:$0xff]   ;;  %v1400_v9 = vld [vmem:[%s2102_s27 + $0x10] ss:$8 sps:$4 sm:$0xff]  }
  0x12   :  { %300 = vmatpush1.bf16.msra.mxu1 %v1397_v5  ;;  %v1401_v10 = vld [vmem:[%s2102_s27 + $0x24] ss:$8 sps:$4 sm:$0xff]   ;;  %v1403_v11 = vld [vmem:[%s2102_s27 + $0x20] ss:$8 sps:$4 sm:$0xff]   ;;  %v1393_v13 = vld [vmem:[%s2101_s24 + $0x30] sm:$0xff]  }
  0x13   :  { %301 = vmatprep.subr.bf16.mxu1 %v1398_v7  ;;  %v1392_v12 = vld [vmem:[%s2101_s24 + $0x28] sm:$0xff]   ;;  %v1394_v14 = vld [vmem:[%s2101_s24 + $0x38] sm:$0xff]   ;;  %v72_v15 = vld [vmem:[%s2103_s1] sm:$0xff] }
  0x14   :  { %1265 = vmatpush3.bf16.msra.mxu0 %v1388_v2  ;;  %v74_v16 = vpack.c.bf16 %v72_v15, %v72_v15 }
  0x15   :  { %1266 = vmatprep.subr.bf16.mxu0 %v1543_v1 }
  0x16   :  { %302 = vmatpush1.bf16.msra.mxu1 %v1400_v9 }
  0x17   :  { %303 = vmatprep.subr.bf16.mxu1 %v1401_v10 }
  0x18   :  { %1267 = vmatpush3.bf16.msra.mxu0 %v1389_v3 }
  0x19   :  { %1268 = vmatprep.subr.bf16.mxu0 %v1543_v1 }
  0x1a   :  { %304 = vmatpush1.bf16.msra.mxu1 %v1403_v11 }
  0x1c   :  { %1269 = vmatpush3.bf16.msra.mxu0 %v1390_v6 }
  0x1d   :  { %1270 = vmatprep.subr.bf16.mxu0 %v1543_v1 }
  0x20   :  { %1271 = vmatpush3.bf16.msra.mxu0 %v1391_v8 }
  0x21   :  { %1272 = vmatprep.subr.bf16.mxu0 %v1543_v1 }
  0x24   :  { %1273 = vmatpush3.bf16.msra.mxu0 %v1392_v12 }
  0x25   :  { %1274 = vmatprep.subr.bf16.mxu0 %v1543_v1 }
  0x28   :  { %1275 = vmatpush3.bf16.msra.mxu0 %v1393_v13 }
  0x29   :  { %1276 = vmatprep.subr.bf16.mxu0 %v1543_v1 }
  0x2c   :  { %1277 = vmatpush3.bf16.msra.mxu0 %v1394_v14 }
  0x2d   :  { %1282 = vmatprep.subr.bf16.mxu0 %v1543_v1 }
  0x2f   :  { %1279 = vmatmul.mubr.bf16.vlgmr.msra.gmra.mrb[0].mxu0 %v74_v16 }
  0x30   :  { %1298 = vmatprep.mubr.msk.bf16.mxu0 %vm1544_vm0, %v1543_v1 }
  0x31   :  { %30 = vsyncpa [#allocation5], 0  ;;  %v1404_v17 = vld [vmem:[%s2102_s27 + $0x34] ss:$8 sps:$4 sm:$0xff]   ;;  %v1406_v18 = vld [vmem:[%s2102_s27 + $0x30] ss:$8 sps:$4 sm:$0xff]   ;;  %v209_v50 = vlaneseq }
  0x32   :  { %305 = vmatprep.subr.bf16.mxu1 %v1404_v17  ;;  %v1407_v19 = vld [vmem:[%s2102_s27 + $0x44] ss:$8 sps:$4 sm:$0xff]   ;;  %v1409_v20 = vld [vmem:[%s2102_s27 + $0x40] ss:$8 sps:$4 sm:$0xff]   ;;  %v1410_v21 = vld [vmem:[%s2102_s27 + $0x54] ss:$8 sps:$4 sm:$0xff]  }
  0x33   :  { %306 = vmatpush1.bf16.msra.mxu1 %v1406_v18  ;;  %v1412_v22 = vld [vmem:[%s2102_s27 + $0x50] ss:$8 sps:$4 sm:$0xff]   ;;  %v1413_v23 = vld [vmem:[%s2102_s27 + $0x64] ss:$8 sps:$4 sm:$0xff]   ;;  %v1415_v24 = vld [vmem:[%s2102_s27 + $0x60] ss:$8 sps:$4 sm:$0xff]  }
  0x34   :  { %307 = vmatprep.subr.bf16.mxu1 %v1407_v19  ;;  %v1545_v25 = vmov 0   ;;  %v1416_v26 = vld [vmem:[%s2102_s27 + $0x74] ss:$8 sps:$4 sm:$0xff]   ;;  %v1418_v27 = vld [vmem:[%s2102_s27 + $0x70] ss:$8 sps:$4 sm:$0xff]   ;;  %s2104_s0 = sld [smem:[#allocation14_spill]] }
  0x35   :  { %331 = vmatprep.mubr.bf16.mxu1 %v1545_v25  ;;  %s2105_s5 = sld [smem:[#allocation11_spill]]  ;;  %v1435_v47 = vld [vmem:[%s2074_s8] sm:$0xff]   ;;  %v1436_v48 = vld [vmem:[%s2074_s8 + $0x8] sm:$0xff]   ;;  %v1437_v49 = vld [vmem:[%s2074_s8 + $0x10] sm:$0xff]   ;;  %v1807_v51 = vshrl.u32 %v209_v50, 7  ;;  %s2106_s7 = sld [smem:[#allocation13_spill]] }
  0x36   :  { %s2107_s27 = sld [smem:[#allocation9_spill]]  ;;  %v1427_v7 = vld [vmem:[%s2078_s12] sm:$0xff]   ;;  %v1428_v9 = vld [vmem:[%s2078_s12 + $0x8] sm:$0xff]   ;;  %v1429_v10 = vld [vmem:[%s2078_s12 + $0x10] sm:$0xff]   ;;  %s2108_s26 = sld [smem:[#allocation15_spill]] }
  0x37   :  { %308 = vmatpush1.bf16.msra.mxu1 %v1409_v20  ;;  %v211_v52 = vsub.s32 0, %v1807_v51  ;;  %v215_v54 = vsub.s32 1, %v1807_v51  ;;  %v1430_v11 = vld [vmem:[%s2078_s12 + $0x18] sm:$0xff]   ;;  %v1431_v12 = vld [vmem:[%s2078_s12 + $0x20] sm:$0xff]   ;;  %v1432_v13 = vld [vmem:[%s2078_s12 + $0x28] sm:$0xff]  }
  0x38   :  { %309 = vmatprep.subr.bf16.mxu1 %v1410_v21  ;;  %v1433_v14 = vld [vmem:[%s2078_s12 + $0x30] sm:$0xff]   ;;  %v1434_v15 = vld [vmem:[%s2078_s12 + $0x38] sm:$0xff]   ;;  %v579_v16 = vld [vmem:[%s2076_s10] sm:$0xff] }
  0x39   :  { %v581_v17 = vpack.c.bf16 %v579_v16, %v579_v16  ;;  %v1438_v18 = vld [vmem:[%s2074_s8 + $0x18] sm:$0xff]   ;;  %v1439_v19 = vld [vmem:[%s2074_s8 + $0x20] sm:$0xff]   ;;  %v1440_v20 = vld [vmem:[%s2074_s8 + $0x28] sm:$0xff]  }
  0x3a   :  { %v1419_v28 = vld [vmem:[%s2104_s0] sm:$0xff]   ;;  %v1420_v29 = vld [vmem:[%s2104_s0 + $0x8] sm:$0xff]   ;;  %v1421_v41 = vld [vmem:[%s2104_s0 + $0x10] sm:$0xff]  }
  0x3b   :  { %310 = vmatpush1.bf16.msra.mxu1 %v1412_v22  ;;  %1283 = vmatpush3.bf16.msra.mxu0 %v1419_v28  ;;  %v1122_v30 = vld [vmem:[%s2105_s5] ss:$0 sm:$0xff]  ;;  %v1422_v42 = vld [vmem:[%s2104_s0 + $0x18] sm:$0xff]   ;;  %v1424_v44 = vld [vmem:[%s2104_s0 + $0x28] sm:$0xff]  }
  0x3c   :  { %311 = vmatprep.subr.bf16.mxu1 %v1413_v23  ;;  %1284 = vmatprep.subr.bf16.mxu0 %v1543_v1  ;;  %v1423_v43 = vld [vmem:[%s2104_s0 + $0x20] sm:$0xff]   ;;  %v1425_v45 = vld [vmem:[%s2104_s0 + $0x30] sm:$0xff]   ;;  %v1426_v46 = vld [vmem:[%s2104_s0 + $0x38] sm:$0xff]  }
  0x3d   :  { %v207_v53 = vld [vmem:[%s2106_s7] sm:$0x3]  ;;  %v1441_v21 = vld [vmem:[%s2074_s8 + $0x30] sm:$0xff]   ;;  %v1442_v22 = vld [vmem:[%s2074_s8 + $0x38] sm:$0xff]  }
  0x3e   :  { %v212_v55 = vrot.slane %v207_v53, %v211_v52  ;;  %v216_v56 = vrot.slane %v207_v53, %v215_v54  ;;  %v73_v2 = vld [vmem:[%s2107_s27] sm:$0xff]  ;;  %v1460_v53 = vld [vmem:[%s2080_s14 + $0x54] ss:$8 sps:$4 sm:$0xff]  }
  0x3f   :  { %312 = vmatpush1.bf16.msra.mxu1 %v1415_v24  ;;  %1285 = vmatpush3.bf16.msra.mxu0 %v1420_v29  ;;  %v1445_v23 = vld [vmem:[%s2080_s14 + $0x4] ss:$8 sps:$4 sm:$0xff]   ;;  %v1147_v24 = vld [vmem:[%s2108_s26] ss:$0 sm:$0xff] }
  0x40   :  { %313 = vmatprep.subr.bf16.mxu1 %v1416_v26  ;;  %1286 = vmatprep.subr.bf16.mxu0 %v1543_v1  ;;  %v1455_v50 = vld [vmem:[%s2080_s14 + $0x40] ss:$8 sps:$4 sm:$0xff]  }
  0x41   :  { %v580_v51 = vld [vmem:[%s2077_s11] sm:$0xff] }
  0x43   :  { %314 = vmatpush1.bf16.msra.mxu1 %v1418_v27  ;;  %1287 = vmatpush3.bf16.msra.mxu0 %v1421_v41  ;;  %v1454_v41 = vld [vmem:[%s2080_s14 + $0x34] ss:$8 sps:$4 sm:$0xff]  }
  0x44   :  { %1302 = vmatprep.subr.bf16.mxu1 %v1543_v1  ;;  %1288 = vmatprep.subr.bf16.mxu0 %v1543_v1 }
  0x47   :  { %1289 = vmatpush3.bf16.msra.mxu0 %v1422_v42  ;;  %v1165_v42 = vld [vmem:[%s2079_s13] ss:$0 sm:$0xff] }
  0x48   :  { %1290 = vmatprep.subr.bf16.mxu0 %v1543_v1 }
  0x4b   :  { %1291 = vmatpush3.bf16.msra.mxu0 %v1423_v43 }
  0x4c   :  { %1292 = vmatprep.subr.bf16.mxu0 %v1543_v1 }
  0x4f   :  { %1293 = vmatpush3.bf16.msra.mxu0 %v1424_v44  ;;  %v1457_v44 = vld [vmem:[%s2080_s14 + $0x44] ss:$8 sps:$4 sm:$0xff]  }
  0x50   :  { %1294 = vmatprep.subr.bf16.mxu0 %v1543_v1 }
  0x53   :  { %1295 = vmatpush3.bf16.msra.mxu0 %v1425_v45 }
  0x54   :  { %1296 = vmatprep.subr.bf16.mxu0 %v1543_v1 }
  0x57   :  { %1297 = vmatpush3.bf16.msra.mxu0 %v1426_v46 }
  0x58   :  { %1322 = vmatprep.subr.bf16.mxu0 %v1543_v1 }
 0x102   :  { %v180_v31 = vpop.f32.mrb[0].mxu0 }
 0x103   :  { %v181_v32 = vadd.f32 %v1122_v30, %v180_v31  ;;  %v1280_v33 = vpop.f32.mrb[1].mxu0 }
 0x104   :  { %v183_v34 = vpop.f32.mrb[2].mxu0 }
 0x105   :  { %v186_v35 = vmul.f32 %v181_v32, %v181_v32  ;;  %v1281_v36 = vpop.f32.mrb[3].mxu0 }
 0x107   :  { %v187_v37 = vsub.f32 0.0, %v186_v35  ;;  %v1443_v35 = vld [vmem:[%s2080_s14] ss:$8 sps:$4 sm:$0xff]  }
 0x109   :  { %v188_v38 = vmul.f32 1.442695, %v187_v37  ;;  %v1448_v37 = vld [vmem:[%s2080_s14 + $0x14] ss:$8 sps:$4 sm:$0xff]  }
 0x10b   :  { %1483 = vpow2.f32 %v188_v38  ;;  %v1446_v38 = vld [vmem:[%s2080_s14 + $0x10] ss:$8 sps:$4 sm:$0xff]  }
 0x115   :  { %v1484_v39 = vpop.eup %1483 }
 0x116   :  { %v190_v40 = vpack.c.bf16 %v1484_v39, %v1484_v39  ;;  %v1451_v39 = vld [vmem:[%s2080_s14 + $0x24] ss:$8 sps:$4 sm:$0xff]  }
 0x118   :  { %332 = vmatmul.mubr.bf16.vlgmr.msra.gmra.mrb[0].mxu1 %v190_v40  ;;  %v1449_v40 = vld [vmem:[%s2080_s14 + $0x20] ss:$8 sps:$4 sm:$0xff]  }
 0x119   :  { %1318 = vmatprep.mubr.msk.bf16.mxu1 %vm1544_vm0, %v1543_v1  ;;  %1303 = vmatpush3.bf16.msra.mxu1 %v1435_v47 }
 0x11a   :  { %1304 = vmatprep.subr.bf16.mxu1 %v1543_v1 }
 0x11d   :  { %1305 = vmatpush3.bf16.msra.mxu1 %v1436_v48 }
 0x11e   :  { %1306 = vmatprep.subr.bf16.mxu1 %v1543_v1 }
 0x121   :  { %1307 = vmatpush3.bf16.msra.mxu1 %v1437_v49 }
 0x122   :  { %1308 = vmatprep.subr.bf16.mxu1 %v1543_v1 }
 0x125   :  { %1309 = vmatpush3.bf16.msra.mxu1 %v1438_v18  ;;  %v714_v18 = vld [vmem:[%s2081_s15] sm:$0x3] }
 0x126   :  { %1310 = vmatprep.subr.bf16.mxu1 %v1543_v1 }
 0x129   :  { %1311 = vmatpush3.bf16.msra.mxu1 %v1439_v19  ;;  %v719_v19 = vrot.slane %v714_v18, %v211_v52 }
 0x12a   :  { %1312 = vmatprep.subr.bf16.mxu1 %v1543_v1 }
 0x12d   :  { %1313 = vmatpush3.bf16.msra.mxu1 %v1440_v20  ;;  %v723_v20 = vrot.slane %v714_v18, %v215_v54 }
 0x12e   :  { %1314 = vmatprep.subr.bf16.mxu1 %v1543_v1 }
 0x131   :  { %1315 = vmatpush3.bf16.msra.mxu1 %v1441_v21 }
 0x132   :  { %1316 = vmatprep.subr.bf16.mxu1 %v1543_v1 }
 0x135   :  { %1317 = vmatpush3.bf16.msra.mxu1 %v1442_v22 }
 0x136   :  { %806 = vmatprep.subr.bf16.mxu1 %v1445_v23 }
 0x1eb   :  { %v333_v57 = vpop.f32.mrb[0].mxu1 }
 0x1ec   :  { %v334_v58 = vadd.f32 %v333_v57, %v212_v55  ;;  %v335_v59 = vpop.f32.mrb[1].mxu1  ;;  %v1458_v57 = vld [vmem:[%s2080_s14 + $0x50] ss:$8 sps:$4 sm:$0xff]  }
 0x1ed   :  { %v336_v60 = vadd.f32 %v335_v59, %v216_v56  ;;  %v337_v61 = vpop.f32.mrb[2].mxu1  ;;  %v1461_v59 = vld [vmem:[%s2080_s14 + $0x60] ss:$8 sps:$4 sm:$0xff]  }
 0x1ee   :  { %576 = vst [vmem:[%s2087_s21 + $0x8] sm:$0xff] %v334_v58  ;;  %v338_v62 = vpop.f32.mrb[3].mxu1  ;;  %v1464_v61 = vld [vmem:[%s2080_s14 + $0x70] ss:$8 sps:$4 sm:$0xff]  }
 0x1ef   :  { %v340_v63 = vmul.f32 0.5, %v336_v60  ;;  %578 = vst [vmem:[%s2087_s21 + $0x18] sm:$0xff] %v336_v60  ;;  %v1466_v60 = vld [vmem:[%s2080_s14 + $0x74] ss:$8 sps:$4 sm:$0xff]  }
 0x1f1   :  { %v341_v0 = vmul.f32 1.442695, %v340_v63 }
 0x1f3   :  { %1485 = vpow2.f32 %v341_v0  ;;  %v1467_v0 = vld [vmem:[%s2082_s16] sm:$0xff]  }
 0x1fd   :  { %v1486_v3 = vpop.eup %1485 }
 0x1fe   :  { %v343_v4 = vmul.f32 %v1486_v3, %v1486_v3  ;;  %v344_v5 = vmul.f32 %v1486_v3, %v73_v2  ;;  %v1468_v2 = vld [vmem:[%s2082_s16 + $0x8] sm:$0xff]   ;;  %v1469_v3 = vld [vmem:[%s2082_s16 + $0x10] sm:$0xff]  }
 0x200   :  { %577 = vst [vmem:[%s2087_s21 + $0x10] sm:$0xff] %v343_v4  ;;  %v345_v6 = vadd.f32 %v344_v5, %v334_v58  ;;  %v1463_v58 = vld [vmem:[%s2080_s14 + $0x64] ss:$8 sps:$4 sm:$0xff]   ;;  %v1470_v4 = vld [vmem:[%s2082_s16 + $0x18] sm:$0xff]  }
 0x201   :  { %v1471_v5 = vld [vmem:[%s2082_s16 + $0x20] sm:$0xff]  }
 0x202   :  { %v346_v8 = vpack.c.bf16 %v345_v6, %v345_v6  ;;  %575 = vst [vmem:[%s2087_s21] sm:$0xff] %v345_v6  ;;  %v1472_v6 = vld [vmem:[%s2082_s16 + $0x28] sm:$0xff]  }
 0x204   :  { %1299 = vmatmul.mubr.bf16.vlgmr.msra.gmra.mrb[4].mxu0 %v346_v8  ;;  %v1474_v8 = vld [vmem:[%s2082_s16 + $0x38] sm:$0xff]  }
 0x205   :  { %1323 = vmatpush3.bf16.msra.mxu0 %v1427_v7  ;;  %1338 = vmatprep.mubr.msk.bf16.mxu0 %vm1544_vm0, %v1543_v1  ;;  %v1473_v7 = vld [vmem:[%s2082_s16 + $0x30] sm:$0xff]   ;;  %s1546_s16 = smov [#allocation2]  }
 0x206   :  { %1324 = vmatprep.subr.bf16.mxu0 %v1543_v1  ;;  %s1092_s30 = sshll.u32 %s1546_s16, 4  ;;  %s1093_s30 = int_to_ptr.vmem [resolvable:$true] %s1092_s30 }
 0x207   :  { %p1500_p1 = scmp.lt.s32.totalorder %s1093_s30, %s1093_s30 }
 0x209   :  { %1325 = vmatpush3.bf16.msra.mxu0 %v1428_v9  ;;  %v1475_v9 = vld [vmem:[%s2084_s18] sm:$0xff]  }
 0x20a   :  { %1326 = vmatprep.subr.bf16.mxu0 %v1543_v1 }
 0x20d   :  { %1327 = vmatpush3.bf16.msra.mxu0 %v1429_v10  ;;  %v1476_v10 = vld [vmem:[%s2084_s18 + $0x8] sm:$0xff]  }
 0x20e   :  { %1328 = vmatprep.subr.bf16.mxu0 %v1543_v1 }
 0x211   :  { %1329 = vmatpush3.bf16.msra.mxu0 %v1430_v11  ;;  %v1477_v11 = vld [vmem:[%s2084_s18 + $0x10] sm:$0xff]  }
 0x212   :  { %1330 = vmatprep.subr.bf16.mxu0 %v1543_v1 }
 0x215   :  { %1331 = vmatpush3.bf16.msra.mxu0 %v1431_v12  ;;  %v1156_v12 = vld [vmem:[%s2075_s9] ss:$0 sm:$0xff] }
 0x216   :  { %1332 = vmatprep.subr.bf16.mxu0 %v1543_v1 }
 0x219   :  { %1333 = vmatpush3.bf16.msra.mxu0 %v1432_v13 }
 0x21a   :  { %1334 = vmatprep.subr.bf16.mxu0 %v1543_v1 }
 0x21d   :  { %1335 = vmatpush3.bf16.msra.mxu0 %v1433_v14 }
 0x21e   :  { %1336 = vmatprep.subr.bf16.mxu0 %v1543_v1 }
 0x221   :  { %1337 = vmatpush3.bf16.msra.mxu0 %v1434_v15 }
 0x222   :  { %1342 = vmatprep.subr.bf16.mxu0 %v1543_v1 }
 0x224   :  { %1339 = vmatmul.mubr.bf16.vlgmr.msra.gmra.mrb[8].mxu0 %v581_v17 }
 0x225   :  { %1358 = vmatprep.mubr.msk.bf16.mxu0 %vm1544_vm0, %v1543_v1  ;;  %1343 = vmatpush3.bf16.msra.mxu0 %v1467_v0 }
 0x226   :  { %1344 = vmatprep.subr.bf16.mxu0 %v1543_v1 }
 0x229   :  { %1345 = vmatpush3.bf16.msra.mxu0 %v1468_v2 }
 0x22a   :  { %1346 = vmatprep.subr.bf16.mxu0 %v1543_v1 }
 0x22d   :  { %1347 = vmatpush3.bf16.msra.mxu0 %v1469_v3 }
 0x22e   :  { %1348 = vmatprep.subr.bf16.mxu0 %v1543_v1 }
 0x231   :  { %1349 = vmatpush3.bf16.msra.mxu0 %v1470_v4 }
 0x232   :  { %1350 = vmatprep.subr.bf16.mxu0 %v1543_v1 }
 0x235   :  { %1351 = vmatpush3.bf16.msra.mxu0 %v1471_v5 }
 0x236   :  { %1352 = vmatprep.subr.bf16.mxu0 %v1543_v1 }
 0x239   :  { %1353 = vmatpush3.bf16.msra.mxu0 %v1472_v6 }
 0x23a   :  { %1354 = vmatprep.subr.bf16.mxu0 %v1543_v1 }
 0x23d   :  { %1355 = vmatpush3.bf16.msra.mxu0 %v1473_v7 }
 0x23e   :  { %1356 = vmatprep.subr.bf16.mxu0 %v1543_v1 }
 0x241   :  { %1357 = vmatpush3.bf16.msra.mxu0 %v1474_v8 }
 0x2d7   :  { %v452_v26 = vpop.f32.mrb[4].mxu0 }
 0x2d8   :  { %v453_v27 = vadd.f32 %v1147_v24, %v452_v26  ;;  %v1300_v28 = vpop.f32.mrb[5].mxu0 }
 0x2d9   :  { %v455_v29 = vpop.f32.mrb[6].mxu0 }
 0x2da   :  { %v458_v30 = vmul.f32 %v453_v27, %v453_v27  ;;  %v1301_v31 = vpop.f32.mrb[7].mxu0 }
 0x2dc   :  { %v459_v32 = vsub.f32 0.0, %v458_v30 }
 0x2de   :  { %v460_v33 = vmul.f32 1.442695, %v459_v32 }
 0x2e0   :  { %1487 = vpow2.f32 %v460_v33  ;;  %v1478_v33 = vld [vmem:[%s2084_s18 + $0x18] sm:$0xff]  }
 0x2ea   :  { %v1488_v34 = vpop.eup %1487 }
 0x2eb   :  { %v462_v36 = vpack.c.bf16 %v1488_v34, %v1488_v34  ;;  %v1479_v34 = vld [vmem:[%s2084_s18 + $0x20] sm:$0xff]  }
 0x2ed   :  { %1319 = vmatmul.mubr.bf16.vlgmr.msra.gmra.mrb[4].mxu1 %v462_v36  ;;  %v1481_v36 = vld [vmem:[%s2084_s18 + $0x30] sm:$0xff]  }
 0x2ee   :  { %807 = vmatpush1.bf16.msra.mxu1 %v1443_v35  ;;  %838 = vmatprep.mubr.bf16.mxu1 %v1545_v25  ;;  %v1452_v25 = vld [vmem:[%s2080_s14 + $0x30] ss:$8 sps:$4 sm:$0xff]   ;;  %v1480_v35 = vld [vmem:[%s2084_s18 + $0x28] sm:$0xff]  }
 0x2ef   :  { %808 = vmatprep.subr.bf16.mxu1 %v1448_v37  ;;  %v1482_v37 = vld [vmem:[%s2084_s18 + $0x38] sm:$0xff]   ;;  %s1495_s18 = scalar_lea.vmem %s1093_s30, 128 }
 0x2f0   :  { %p1496_p0 = scmp.ne.s32.totalorder %s1093_s30, %s1495_s18  ;;  %p1501_p2 = scmp.lt.s32.totalorder %s1495_s18, %s1495_s18 }
 0x2f2   :  { %809 = vmatpush1.bf16.msra.mxu1 %v1446_v38  ;;  %v1190_v38 = vld [vmem:[%s2083_s17] ss:$0 sm:$0xff]  ;;  %p1502_p3 = por %p1501_p2, %p1500_p1 }
 0x2f3   :  { %810 = vmatprep.subr.bf16.mxu1 %v1451_v39 }
 0x2f4   :  { %p1503_p4 = pnand %p1502_p3, %p1496_p0 }
 0x2f6   :  { %811 = vmatpush1.bf16.msra.mxu1 %v1449_v40 }
 0x2f7   :  { %v687_v43 = vpop.f32.mrb[8].mxu0  ;;  %812 = vmatprep.subr.bf16.mxu1 %v1454_v41 }
 0x2f8   :  { %v688_v45 = vadd.f32 %v1165_v42, %v687_v43  ;;  %v1340_v46 = vpop.f32.mrb[9].mxu0 }
 0x2f9   :  { %v690_v47 = vpop.f32.mrb[10].mxu0 }
 0x2fa   :  { %v693_v48 = vmul.f32 %v688_v45, %v688_v45  ;;  %v1341_v49 = vpop.f32.mrb[11].mxu0  ;;  %813 = vmatpush1.bf16.msra.mxu1 %v1452_v25 }
 0x2fb   :  { %814 = vmatprep.subr.bf16.mxu1 %v1457_v44 }
 0x2fc   :  { %v694_v55 = vsub.f32 0.0, %v693_v48 }
 0x2fe   :  { %v695_v56 = vmul.f32 1.442695, %v694_v55  ;;  %815 = vmatpush1.bf16.msra.mxu1 %v1455_v50 }
 0x2ff   :  { %816 = vmatprep.subr.bf16.mxu1 %v1460_v53 }
 0x300   :  { %1489 = vpow2.f32 %v695_v56 }
 0x302   :  { %817 = vmatpush1.bf16.msra.mxu1 %v1458_v57 }
 0x303   :  { %818 = vmatprep.subr.bf16.mxu1 %v1463_v58 }
 0x306   :  { %819 = vmatpush1.bf16.msra.mxu1 %v1461_v59 }
 0x307   :  { %820 = vmatprep.subr.bf16.mxu1 %v1466_v60 }
 0x30a   :  { %v1490_v62 = vpop.eup %1489  ;;  %821 = vmatpush1.bf16.msra.mxu1 %v1464_v61 }
 0x30b   :  { %v697_v63 = vpack.c.bf16 %v1490_v62, %v1490_v62  ;;  %1362 = vmatprep.subr.bf16.mxu1 %v1543_v1 }
 0x30d   :  { %839 = vmatmul.mubr.bf16.vlgmr.msra.gmra.mrb[8].mxu1 %v697_v63 }
 0x30e   :  { %1378 = vmatprep.mubr.msk.bf16.mxu1 %vm1544_vm0, %v1543_v1  ;;  %1363 = vmatpush3.bf16.msra.mxu1 %v1475_v9 }
 0x30f   :  { %1364 = vmatprep.subr.bf16.mxu1 %v1543_v1 }
 0x312   :  { %1365 = vmatpush3.bf16.msra.mxu1 %v1476_v10 }
 0x313   :  { %1366 = vmatprep.subr.bf16.mxu1 %v1543_v1 }
 0x316   :  { %1367 = vmatpush3.bf16.msra.mxu1 %v1477_v11 }
 0x317   :  { %1368 = vmatprep.subr.bf16.mxu1 %v1543_v1 }
 0x31a   :  { %1369 = vmatpush3.bf16.msra.mxu1 %v1478_v33 }
 0x31b   :  { %1370 = vmatprep.subr.bf16.mxu1 %v1543_v1 }
 0x31e   :  { %1371 = vmatpush3.bf16.msra.mxu1 %v1479_v34 }
 0x31f   :  { %1372 = vmatprep.subr.bf16.mxu1 %v1543_v1 }
 0x322   :  { %1373 = vmatpush3.bf16.msra.mxu1 %v1480_v35 }
 0x323   :  { %1374 = vmatprep.subr.bf16.mxu1 %v1543_v1 }
 0x326   :  { %1375 = vmatpush3.bf16.msra.mxu1 %v1481_v36 }
 0x327   :  { %1376 = vmatprep.subr.bf16.mxu1 %v1543_v1 }
 0x32a   :  { %1377 = vmatpush3.bf16.msra.mxu1 %v1482_v37 }
 0x3c0   :  { %v568_v13 = vpop.f32.mrb[4].mxu1 }
 0x3c1   :  { %v569_v14 = vadd.f32 %v1156_v12, %v568_v13  ;;  %v1320_v15 = vpop.f32.mrb[5].mxu1 }
 0x3c2   :  { %v571_v16 = vpop.f32.mrb[6].mxu1 }
 0x3c3   :  { %574 = vst [vmem:[#allocation2] sm:$0xff] %v569_v14  ;;  %v1321_v17 = vpop.f32.mrb[7].mxu1 }
 0x3e0   :  { %v840_v21 = vpop.f32.mrb[8].mxu1 }
 0x3e1   :  { %v841_v22 = vadd.f32 %v840_v21, %v719_v19  ;;  %v842_v23 = vpop.f32.mrb[9].mxu1 }
 0x3e2   :  { %v843_v24 = vadd.f32 %v842_v23, %v723_v20  ;;  %v844_v26 = vpop.f32.mrb[10].mxu1 }
 0x3e3   :  { %1083 = vst [vmem:[%s2089_s23 + $0x8] sm:$0xff] %v841_v22  ;;  %v845_v27 = vpop.f32.mrb[11].mxu1 }
 0x3e4   :  { %v847_v28 = vmul.f32 0.5, %v843_v24  ;;  %1085 = vst [vmem:[%s2089_s23 + $0x18] sm:$0xff] %v843_v24 }
 0x3e6   :  { %v848_v29 = vmul.f32 1.442695, %v847_v28 }
 0x3e8   :  { %1491 = vpow2.f32 %v848_v29 }
 0x3f2   :  { %v1492_v52 = vpop.eup %1491 }
 0x3f3   :  { %v850_v54 = vmul.f32 %v1492_v52, %v1492_v52  ;;  %v851_v30 = vmul.f32 %v1492_v52, %v580_v51 }
 0x3f5   :  { %1084 = vst [vmem:[%s2089_s23 + $0x10] sm:$0xff] %v850_v54  ;;  %v852_v31 = vadd.f32 %v851_v30, %v841_v22 }
 0x3f7   :  { %v853_v32 = vpack.c.bf16 %v852_v31, %v852_v31  ;;  %1082 = vst [vmem:[%s2089_s23] sm:$0xff] %v852_v31 }
 0x3f9   :  { %1359 = vmatmul.mubr.bf16.vlgmr.msra.gmra.mrb[12].mxu0 %v853_v32 }
 0x4cc   :  { %v959_v39 = vpop.f32.mrb[12].mxu0 }
 0x4cd   :  { %v960_v40 = vadd.f32 %v1190_v38, %v959_v39  ;;  %v1360_v41 = vpop.f32.mrb[13].mxu0 }
 0x4ce   :  { %v962_v42 = vpop.f32.mrb[14].mxu0 }
 0x4cf   :  { %v965_v25 = vmul.f32 %v960_v40, %v960_v40  ;;  %v1361_v43 = vpop.f32.mrb[15].mxu0 }
 0x4d1   :  { %v966_v44 = vsub.f32 0.0, %v965_v25 }
 0x4d3   :  { %v967_v45 = vmul.f32 1.442695, %v966_v44 }
 0x4d5   :  { %1493 = vpow2.f32 %v967_v45 }
 0x4df   :  { %v1494_v46 = vpop.eup %1493 }
 0x4e0   :  { %v969_v1 = vpack.c.bf16 %v1494_v46, %v1494_v46 }
 0x4e2   :  { %1379 = vmatmul.mubr.bf16.vlgmr.msra.gmra.mrb[12].mxu1 %v969_v1 }
 0x4e3   :  { %1506 = shalt.err (!%p1503_p4)
}
 0x4e4   :  { %s1507_s27 = scalar_lea.hbm %s2086_s20, 128 }
 0x4e5   :  { %p1508_p5 = scmp.ne.s32.totalorder %s2086_s20, %s1507_s27  ;;  %p1511_p6 = scmp.lt.u32.totalorder %s1507_s27, %s2086_s20 }
 0x4e7   :  { %p1513_p7 = pnand %p1511_p6, %p1508_p5 }
 0x4e9   :  { %1516 = shalt.err (!%p1513_p7)
}
 0x4ea   :  { %1095 = dma.vmem_to_hbm [thread:$0]  %s1093_s30, 128, %s2086_s20, [#allocation3]   ;;  %v1199_v47 = vld [vmem:[%s2085_s19] ss:$0 sm:$0xff] }
 0x4eb   :  { %s1547_s2 = smov [#allocation4]  }
 0x4ec   :  { %s1104_s24 = sshll.u32 %s1547_s2, 4  ;;  %s1105_s24 = int_to_ptr.vmem [resolvable:$true] %s1104_s24 }
 0x4ed   :  { %s1517_s0 = scalar_lea.vmem %s1105_s24, 128  ;;  %p1522_p9 = scmp.lt.s32.totalorder %s1105_s24, %s1105_s24 }
 0x4ee   :  { %p1518_p8 = scmp.ne.s32.totalorder %s1105_s24, %s1517_s0  ;;  %p1523_p10 = scmp.lt.s32.totalorder %s1517_s0, %s1517_s0 }
 0x4f0   :  { %p1524_p11 = por %p1523_p10, %p1522_p9 }
 0x4f2   :  { %p1525_p12 = pnand %p1524_p11, %p1518_p8 }
 0x5b5   :  { %v1075_v48 = vpop.f32.mrb[12].mxu1 }
 0x5b6   :  { %v1076_v49 = vadd.f32 %v1199_v47, %v1075_v48  ;;  %v1380_v50 = vpop.f32.mrb[13].mxu1 }
 0x5b7   :  { %v1078_v53 = vpop.f32.mrb[14].mxu1 }
 0x5b8   :  { %1081 = vst [vmem:[#allocation4] sm:$0xff] %v1076_v49  ;;  %v1381_v55 = vpop.f32.mrb[15].mxu1 }
 0x5b9   :  { %1528 = shalt.err (!%p1525_p12)
}
 0x5ba   :  { %s1529_s19 = scalar_lea.hbm %s2088_s22, 128 }
 0x5bb   :  { %p1530_p13 = scmp.ne.s32.totalorder %s2088_s22, %s1529_s19  ;;  %p1533_p0 = scmp.lt.u32.totalorder %s1529_s19, %s2088_s22 }
 0x5bd   :  { %p1535_p1 = pnand %p1533_p0, %p1530_p13 }
 0x5bf   :  { %1538 = shalt.err (!%p1535_p1)
}
 0x5c0   :  { %1107 = dma.vmem_to_hbm [thread:$0]  %s1105_s24, 128, %s2088_s22, [#allocation5]  }
 0x5c1   :  { %1539 = dma.done.wait [#allocation3], 128  }
 0x5c2   :  { %1540 = vsyncadd [#allocation3], 4294967168 }
 0x5c3   :  { %1541 = dma.done.wait [#allocation5], 128  }
 0x5c4   :  { %1542 = vsyncadd [#allocation5], 4294967168 }
 0x5c5   :  { %1120 = vsyncpa [#allocation3], 1 }
 0x5c6   :  { %1121 = vsyncpa [#allocation5], 1 }

</bundles_post_ra>
